<compile_context>
chip_gen: v5e
topology: v5e:2x2
jax: 0.10.0
libtpu: 0.0.40
codegen_flags: <defaults>
</compile_context>

<pallas_src>
import jax
import jax.numpy as jnp
from jax.experimental import pallas as pl
from jax.experimental.pallas import tpu as pltpu


def _make_up_kernel(*, cout, h, w, h2, w2, t_h, pad_y0, pad_x0,
                    n_x1_blocks, n_row_tiles, single_tile):
    """Builds the fused deconv + pad + skip-add kernel (static geometry baked in)."""
    two_w = 2 * w
    c0 = pad_x0
    c1 = pad_x0 + two_w
    mask_rows = (not single_tile) and (h2 > 2 * h)   # bottom pad rows inside a tile
    guard_pad_tile = n_row_tiles > n_x1_blocks        # extra pad-only bottom tile
    unroll = t_h <= 32

    def kernel(x1_ref, w_ref, b_ref, x2_ref, o_ref):
        # x1_ref : (1, t_h, cin, 2w)   width-duplicated x1 rows (channels on sublanes)
        # w_ref  : (4*cout, cin)       rows ordered (kh, kw, co)
        # b_ref  : (4*cout, 1)
        # x2_ref / o_ref : (1, cout, t_out, w2)   NCHW row tile of x2 / out
        i = pl.program_id(1)

        def deconv_tile():
            wp = w_ref[...]
            bias = b_ref[...].astype(jnp.float32)
            lane = jax.lax.broadcasted_iota(jnp.int32, (1, two_w), 1)
            is_even = (lane & 1) == 0                 # kw = output-column parity

            # Pure-padding border columns / rows: copy x2 only there.
            if c0 > 0:
                o_ref[0, :, :, 0:c0] = x2_ref[0, :, :, 0:c0]
            if c1 < w2:
                o_ref[0, :, :, c1:w2] = x2_ref[0, :, :, c1:w2]
            if single_tile:
                if pad_y0 > 0:
                    o_ref[0, :, 0:pad_y0, :] = x2_ref[0, :, 0:pad_y0, :]
                if pad_y0 + 2 * h < h2:
                    o_ref[0, :, pad_y0 + 2 * h:h2, :] = (
                        x2_ref[0, :, pad_y0 + 2 * h:h2, :])

            def row_body(hh, carry):
                # One input row -> two output rows (kh = 0, 1).
                xrow = x1_ref[0, hh]                                  # (cin, 2w)
                y = jnp.dot(wp, xrow,
                            preferred_element_type=jnp.float32)       # (4*cout, 2w)
                y = y + bias
                dec = []
                for kh in range(2):
                    even_tap = y[(2 * kh) * cout:(2 * kh + 1) * cout, :]
                    odd_tap = y[(2 * kh + 1) * cout:(2 * kh + 2) * cout, :]
                    dec.append(jnp.where(is_even, even_tap, odd_tap))  # (cout, 2w)
                if mask_rows:
                    valid = (i * t_h + hh) < h        # bottom-pad rows contribute 0
                    dec = [jnp.where(valid, d, 0.0) for d in dec]
                for kh in range(2):
                    r = pad_y0 + 2 * hh + kh
                    x2v = x2_ref[0, :, r, c0:c1].astype(jnp.float32)
                    o_ref[0, :, r, c0:c1] = (x2v + dec[kh]).astype(o_ref.dtype)
                return carry

            if unroll:
                for hh in range(t_h):
                    row_body(hh, 0)
            else:
                jax.lax.fori_loop(0, t_h, row_body, 0)

        if guard_pad_tile:
            # Extra bottom tile made only of padding rows: pure x2, skip the matmuls.
            @pl.when(i >= n_x1_blocks)
            def _():
                o_ref[...] = x2_ref[...]

            @pl.when(i < n_x1_blocks)
            def _():
                deconv_tile()
        else:
            deconv_tile()

    return kernel


def up_forward(x1, x2, weight, bias):
    """out = x2 + pad(conv_transpose2d(x1, weight, bias, k=2, s=2)); NCHW API."""
    n, cin, h, w = x1.shape
    n2, cout, h2, w2 = x2.shape
    assert n == n2
    assert weight.shape == (cin, cout, 2, 2)
    assert bias.shape == (cout,)
    diff_y = h2 - 2 * h
    diff_x = w2 - 2 * w
    # TODO(synk): negative diff (F.pad with negative widths == crop) not implemented.
    assert diff_y >= 0 and diff_x >= 0
    pad_y0 = diff_y // 2
    pad_x0 = diff_x // 2

    # ---- static row tiling over x1's H --------------------------------------
    itemsize = jnp.dtype(x2.dtype).itemsize
    if pad_y0 != 0:
        # TODO(synk): offset row tiling for pad_y0 > 0 (diff_y >= 2); a single
        # whole-image row tile is fine for UTVNet (|diff| <= 1 in practice) but
        # could exceed VMEM for very large feature maps.
        t_h, t_out = h, h2
    else:
        pair_bytes = 2 * w2 * cout * itemsize       # bytes of one output row pair
        t_h = (1 << 20) // max(pair_bytes, 1)       # ~1 MiB output tile target
        t_h = max(1, min(t_h, h, 32))               # cap unroll length / VMEM
        if h >= 4:
            t_h = max(4, (t_h // 4) * 4)            # -> t_out multiple of 8
        t_out = 2 * t_h
        if t_out % 8 != 0 and t_out != h2:          # tiny-h corner case
            t_h, t_out = h, h2
    single_tile = (t_out == h2)
    n_x1_blocks = -(-h // t_h)
    n_row_tiles = -(-h2 // t_out)

    # ---- tiny parameter / x1 repacking (XLA, small tensors only) ------------
    # wp[(2*kh + kw)*cout + co, ci] = weight[ci, co, kh, kw]
    wp = jnp.transpose(weight, (2, 3, 1, 0)).reshape(4 * cout, cin)
    b4 = jnp.tile(bias, 4).reshape(4 * cout, 1)
    # x1 -> (n, h, cin, 2w): channels on sublanes, columns duplicated so each
    # deconv tap is a lane-parity select of one matmul result (no in-kernel
    # transpose / reshape / strided store).
    x1p = jnp.repeat(jnp.transpose(x1, (0, 2, 1, 3)), 2, axis=3)

    kernel = _make_up_kernel(
        cout=cout, h=h, w=w, h2=h2, w2=w2, t_h=t_h, pad_y0=pad_y0,
        pad_x0=pad_x0, n_x1_blocks=n_x1_blocks, n_row_tiles=n_row_tiles,
        single_tile=single_tile)

    return pl.pallas_call(
        kernel,
        out_shape=jax.ShapeDtypeStruct((n, cout, h2, w2), x2.dtype),
        grid_spec=pltpu.PrefetchScalarGridSpec(
            num_scalar_prefetch=0,
            grid=(n, n_row_tiles),
            in_specs=[
                pl.BlockSpec((1, t_h, cin, 2 * w),
                             lambda b, i: (b, jnp.minimum(i, n_x1_blocks - 1), 0, 0)),
                pl.BlockSpec((4 * cout, cin), lambda b, i: (0, 0)),
                pl.BlockSpec((4 * cout, 1), lambda b, i: (0, 0)),
                pl.BlockSpec((1, cout, t_out, w2), lambda b, i: (b, 0, i, 0)),
            ],
            out_specs=pl.BlockSpec((1, cout, t_out, w2),
                                   lambda b, i: (b, 0, i, 0)),
        ),
        compiler_params=pltpu.CompilerParams(
            dimension_semantics=("parallel", "parallel"),
            vmem_limit_bytes=32 * 1024 * 1024),
    )(x1p, wp, b4, x2)


# ------------------------------- reference -----------------------------------

def up_reference(x1, x2, weight, bias):
    """Pure-JAX reference of the PyTorch forward."""
    n, cin, h, w = x1.shape
    _, cout, h2, w2 = x2.shape
    y = jnp.einsum('nihw,iokl->nohkwl', x1, weight)
    y = y.reshape(n, cout, 2 * h, 2 * w) + bias[None, :, None, None]
    diff_y, diff_x = h2 - 2 * h, w2 - 2 * w
    y = jnp.pad(y, ((0, 0), (0, 0),
                    (diff_y // 2, diff_y - diff_y // 2),
                    (diff_x // 2, diff_x - diff_x // 2)))
    return x2 + y


# --------------------------------- main ---------------------------------------

if __name__ == "__main__":
    key = jax.random.PRNGKey(0)
    k1, k2, k3, k4 = jax.random.split(key, 4)

    n, in_ch, out_ch = 2, 8, 4
    h, w = 8, 8

    # Deterministic params (shapes from nn.ConvTranspose2d(in_ch, out_ch, 2, stride=2)).
    bound = 1.0 / (in_ch * 2 * 2) ** 0.5
    weight = jax.random.uniform(k3, (in_ch, out_ch, 2, 2), jnp.float32,
                                minval=-bound, maxval=bound)
    bias = jax.random.uniform(k4, (out_ch,), jnp.float32,
                              minval=-bound, maxval=bound)

    up_fn = jax.jit(up_forward)

    # (h2, w2): exact 2x upsample; odd skip (right/bottom pad -> extra pad tile);
    # diff=2 (symmetric pad -> single-tile fallback path).
    for h2, w2 in [(16, 16), (17, 17), (18, 18)]:
        x1 = jax.random.normal(k1, (n, in_ch, h, w), jnp.float32)
        x2 = jax.random.normal(k2, (n, out_ch, h2, w2), jnp.float32)

        out = jax.block_until_ready(up_fn(x1, x2, weight, bias))
        ref = jax.block_until_ready(up_reference(x1, x2, weight, bias))

        assert out.shape == (n, out_ch, h2, w2), out.shape
        err = float(jnp.abs(out - ref).max())
        # Tolerance allows for different MXU bf16-pass choices between the
        # Mosaic matmul and the XLA reference einsum on f32 inputs.
        assert jnp.allclose(out, ref, atol=5e-3, rtol=5e-3), (h2, w2, err)

    print("KERNEL_OK")
</pallas_src>

<mosaic_0001>
module attributes {stable_mosaic.version = 11 : i64} {
  func.func @kernel(%arg0: i32, %arg1: i32, %arg2: memref<1x8x8x16xf32, #tpu.memory_space<vmem>>, %arg3: memref<16x8xf32, #tpu.memory_space<vmem>>, %arg4: memref<16x1xf32, #tpu.memory_space<vmem>>, %arg5: memref<1x4x16x16xf32, #tpu.memory_space<vmem>>, %arg6: memref<1x4x16x16xf32, #tpu.memory_space<vmem>>) attributes {dimension_semantics = [#tpu.dimension_semantics<parallel>, #tpu.dimension_semantics<parallel>], iteration_bounds = array<i64: 2, 1>, scalar_prefetch = 0 : i64, scratch_operands = 0 : i64, tpu.core_type = #tpu.core_type<tc>, window_params = [{transform_indices = @transform_0, window_bounds = array<i64: 1, 8, 8, 16>}, {pipeline_mode = #tpu.pipeline_mode<synchronous>, transform_indices = @transform_1, window_bounds = array<i64: 16, 8>}, {pipeline_mode = #tpu.pipeline_mode<synchronous>, transform_indices = @transform_2, window_bounds = array<i64: 16, 1>}, {transform_indices = @transform_3, window_bounds = array<i64: 1, 4, 16, 16>}, {transform_indices = @transform_4, window_bounds = array<i64: 1, 4, 16, 16>}]} {
    %c0 = arith.constant 0 : index
    %c0_0 = arith.constant 0 : index
    %0 = vector.load %arg3[%c0, %c0_0] : memref<16x8xf32, #tpu.memory_space<vmem>>, vector<16x8xf32>
    %c0_1 = arith.constant 0 : index
    %c0_2 = arith.constant 0 : index
    %1 = vector.load %arg4[%c0_1, %c0_2] : memref<16x1xf32, #tpu.memory_space<vmem>>, vector<16x1xf32>
    %2 = tpu.iota {dimensions = array<i32: 1>} : vector<1x16xi32>
    %c1_i32 = arith.constant 1 : i32
    %3 = vector.broadcast %c1_i32 : i32 to vector<1x16xi32>
    %4 = arith.andi %2, %3 : vector<1x16xi32>
    %c0_i32 = arith.constant 0 : i32
    %5 = vector.broadcast %c0_i32 : i32 to vector<1x16xi32>
    %6 = arith.cmpi eq, %4, %5 : vector<1x16xi32>
    %c0_3 = arith.constant 0 : index
    %c0_4 = arith.constant 0 : index
    %c0_5 = arith.constant 0 : index
    %c0_6 = arith.constant 0 : index
    %7 = vector.load %arg2[%c0_3, %c0_4, %c0_5, %c0_6] : memref<1x8x8x16xf32, #tpu.memory_space<vmem>>, vector<1x1x8x16xf32>
    %8 = vector.shape_cast %7 : vector<1x1x8x16xf32> to vector<8x16xf32>
    %cst = arith.constant dense<0.000000e+00> : vector<16x16xf32>
    %9 = tpu.matmul %0, %8, %cst {dimension_numbers = #tpu.dot_dimension_numbers<[1], [0], [0], [1], [0, 0, 1, 1], [], []>} : vector<16x8xf32>, vector<8x16xf32>, vector<16x16xf32> -> vector<16x16xf32>
    %10 = vector.broadcast %1 : vector<16x1xf32> to vector<16x16xf32>
    %11 = arith.addf %9, %10 : vector<16x16xf32>
    %12 = vector.extract_strided_slice %11 {offsets = [0, 0], sizes = [4, 16], strides = [1, 1]} : vector<16x16xf32> to vector<4x16xf32>
    %13 = vector.extract_strided_slice %11 {offsets = [4, 0], sizes = [4, 16], strides = [1, 1]} : vector<16x16xf32> to vector<4x16xf32>
    %14 = vector.shape_cast %6 : vector<1x16xi1> to vector<1x16xi1>
    %15 = vector.broadcast %14 : vector<1x16xi1> to vector<4x16xi1>
    %16 = arith.select %15, %12, %13 : vector<4x16xi1>, vector<4x16xf32>
    %17 = vector.extract_strided_slice %11 {offsets = [8, 0], sizes = [4, 16], strides = [1, 1]} : vector<16x16xf32> to vector<4x16xf32>
    %18 = vector.extract_strided_slice %11 {offsets = [12, 0], sizes = [4, 16], strides = [1, 1]} : vector<16x16xf32> to vector<4x16xf32>
    %19 = vector.shape_cast %6 : vector<1x16xi1> to vector<1x16xi1>
    %20 = vector.broadcast %19 : vector<1x16xi1> to vector<4x16xi1>
    %21 = arith.select %20, %17, %18 : vector<4x16xi1>, vector<4x16xf32>
    %c0_7 = arith.constant 0 : index
    %c0_8 = arith.constant 0 : index
    %c0_9 = arith.constant 0 : index
    %c0_10 = arith.constant 0 : index
    %22 = vector.load %arg5[%c0_7, %c0_8, %c0_9, %c0_10] : memref<1x4x16x16xf32, #tpu.memory_space<vmem>>, vector<1x4x1x16xf32>
    %23 = vector.shape_cast %22 : vector<1x4x1x16xf32> to vector<4x16xf32>
    %24 = arith.addf %23, %16 : vector<4x16xf32>
    %c0_11 = arith.constant 0 : index
    %c0_12 = arith.constant 0 : index
    %c0_13 = arith.constant 0 : index
    %c0_14 = arith.constant 0 : index
    %25 = vector.load %arg6[%c0_11, %c0_12, %c0_13, %c0_14] : memref<1x4x16x16xf32, #tpu.memory_space<vmem>>, vector<1x4x1x16xf32>
    %26 = vector.shape_cast %25 : vector<1x4x1x16xf32> to vector<4x16xf32>
    %27 = vector.shape_cast %24 : vector<4x16xf32> to vector<1x4x1x16xf32>
    tpu.vector_store %arg6[%c0_11, %c0_12, %c0_13, %c0_14], %27 {strides = array<i32>} : memref<1x4x16x16xf32, #tpu.memory_space<vmem>>, vector<1x4x1x16xf32>,
    %c0_15 = arith.constant 0 : index
    %c0_16 = arith.constant 0 : index
    %c1 = arith.constant 1 : index
    %c0_17 = arith.constant 0 : index
    %28 = vector.load %arg5[%c0_15, %c0_16, %c1, %c0_17] : memref<1x4x16x16xf32, #tpu.memory_space<vmem>>, vector<1x4x1x16xf32>
    %29 = vector.shape_cast %28 : vector<1x4x1x16xf32> to vector<4x16xf32>
    %30 = arith.addf %29, %21 : vector<4x16xf32>
    %c0_18 = arith.constant 0 : index
    %c0_19 = arith.constant 0 : index
    %c1_20 = arith.constant 1 : index
    %c0_21 = arith.constant 0 : index
    %31 = vector.load %arg6[%c0_18, %c0_19, %c1_20, %c0_21] : memref<1x4x16x16xf32, #tpu.memory_space<vmem>>, vector<1x4x1x16xf32>
    %32 = vector.shape_cast %31 : vector<1x4x1x16xf32> to vector<4x16xf32>
    %33 = vector.shape_cast %30 : vector<4x16xf32> to vector<1x4x1x16xf32>
    tpu.vector_store %arg6[%c0_18, %c0_19, %c1_20, %c0_21], %33 {strides = array<i32>} : memref<1x4x16x16xf32, #tpu.memory_space<vmem>>, vector<1x4x1x16xf32>,
    %c0_22 = arith.constant 0 : index
    %c1_23 = arith.constant 1 : index
    %c0_24 = arith.constant 0 : index
    %c0_25 = arith.constant 0 : index
    %34 = vector.load %arg2[%c0_22, %c1_23, %c0_24, %c0_25] : memref<1x8x8x16xf32, #tpu.memory_space<vmem>>, vector<1x1x8x16xf32>
    %35 = vector.shape_cast %34 : vector<1x1x8x16xf32> to vector<8x16xf32>
    %cst_26 = arith.constant dense<0.000000e+00> : vector<16x16xf32>
    %36 = tpu.matmul %0, %35, %cst_26 {dimension_numbers = #tpu.dot_dimension_numbers<[1], [0], [0], [1], [0, 0, 1, 1], [], []>} : vector<16x8xf32>, vector<8x16xf32>, vector<16x16xf32> -> vector<16x16xf32>
    %37 = vector.broadcast %1 : vector<16x1xf32> to vector<16x16xf32>
    %38 = arith.addf %36, %37 : vector<16x16xf32>
    %39 = vector.extract_strided_slice %38 {offsets = [0, 0], sizes = [4, 16], strides = [1, 1]} : vector<16x16xf32> to vector<4x16xf32>
    %40 = vector.extract_strided_slice %38 {offsets = [4, 0], sizes = [4, 16], strides = [1, 1]} : vector<16x16xf32> to vector<4x16xf32>
    %41 = vector.shape_cast %6 : vector<1x16xi1> to vector<1x16xi1>
    %42 = vector.broadcast %41 : vector<1x16xi1> to vector<4x16xi1>
    %43 = arith.select %42, %39, %40 : vector<4x16xi1>, vector<4x16xf32>
    %44 = vector.extract_strided_slice %38 {offsets = [8, 0], sizes = [4, 16], strides = [1, 1]} : vector<16x16xf32> to vector<4x16xf32>
    %45 = vector.extract_strided_slice %38 {offsets = [12, 0], sizes = [4, 16], strides = [1, 1]} : vector<16x16xf32> to vector<4x16xf32>
    %46 = vector.shape_cast %6 : vector<1x16xi1> to vector<1x16xi1>
    %47 = vector.broadcast %46 : vector<1x16xi1> to vector<4x16xi1>
    %48 = arith.select %47, %44, %45 : vector<4x16xi1>, vector<4x16xf32>
    %c0_27 = arith.constant 0 : index
    %c0_28 = arith.constant 0 : index
    %c2 = arith.constant 2 : index
    %c0_29 = arith.constant 0 : index
    %49 = vector.load %arg5[%c0_27, %c0_28, %c2, %c0_29] : memref<1x4x16x16xf32, #tpu.memory_space<vmem>>, vector<1x4x1x16xf32>
    %50 = vector.shape_cast %49 : vector<1x4x1x16xf32> to vector<4x16xf32>
    %51 = arith.addf %50, %43 : vector<4x16xf32>
    %c0_30 = arith.constant 0 : index
    %c0_31 = arith.constant 0 : index
    %c2_32 = arith.constant 2 : index
    %c0_33 = arith.constant 0 : index
    %52 = vector.load %arg6[%c0_30, %c0_31, %c2_32, %c0_33] : memref<1x4x16x16xf32, #tpu.memory_space<vmem>>, vector<1x4x1x16xf32>
    %53 = vector.shape_cast %52 : vector<1x4x1x16xf32> to vector<4x16xf32>
    %54 = vector.shape_cast %51 : vector<4x16xf32> to vector<1x4x1x16xf32>
    tpu.vector_store %arg6[%c0_30, %c0_31, %c2_32, %c0_33], %54 {strides = array<i32>} : memref<1x4x16x16xf32, #tpu.memory_space<vmem>>, vector<1x4x1x16xf32>,
    %c0_34 = arith.constant 0 : index
    %c0_35 = arith.constant 0 : index
    %c3 = arith.constant 3 : index
    %c0_36 = arith.constant 0 : index
    %55 = vector.load %arg5[%c0_34, %c0_35, %c3, %c0_36] : memref<1x4x16x16xf32, #tpu.memory_space<vmem>>, vector<1x4x1x16xf32>
    %56 = vector.shape_cast %55 : vector<1x4x1x16xf32> to vector<4x16xf32>
    %57 = arith.addf %56, %48 : vector<4x16xf32>
    %c0_37 = arith.constant 0 : index
    %c0_38 = arith.constant 0 : index
    %c3_39 = arith.constant 3 : index
    %c0_40 = arith.constant 0 : index
    %58 = vector.load %arg6[%c0_37, %c0_38, %c3_39, %c0_40] : memref<1x4x16x16xf32, #tpu.memory_space<vmem>>, vector<1x4x1x16xf32>
    %59 = vector.shape_cast %58 : vector<1x4x1x16xf32> to vector<4x16xf32>
    %60 = vector.shape_cast %57 : vector<4x16xf32> to vector<1x4x1x16xf32>
    tpu.vector_store %arg6[%c0_37, %c0_38, %c3_39, %c0_40], %60 {strides = array<i32>} : memref<1x4x16x16xf32, #tpu.memory_space<vmem>>, vector<1x4x1x16xf32>,
    %c0_41 = arith.constant 0 : index
    %c2_42 = arith.constant 2 : index
    %c0_43 = arith.constant 0 : index
    %c0_44 = arith.constant 0 : index
    %61 = vector.load %arg2[%c0_41, %c2_42, %c0_43, %c0_44] : memref<1x8x8x16xf32, #tpu.memory_space<vmem>>, vector<1x1x8x16xf32>
    %62 = vector.shape_cast %61 : vector<1x1x8x16xf32> to vector<8x16xf32>
    %cst_45 = arith.constant dense<0.000000e+00> : vector<16x16xf32>
    %63 = tpu.matmul %0, %62, %cst_45 {dimension_numbers = #tpu.dot_dimension_numbers<[1], [0], [0], [1], [0, 0, 1, 1], [], []>} : vector<16x8xf32>, vector<8x16xf32>, vector<16x16xf32> -> vector<16x16xf32>
    %64 = vector.broadcast %1 : vector<16x1xf32> to vector<16x16xf32>
    %65 = arith.addf %63, %64 : vector<16x16xf32>
    %66 = vector.extract_strided_slice %65 {offsets = [0, 0], sizes = [4, 16], strides = [1, 1]} : vector<16x16xf32> to vector<4x16xf32>
    %67 = vector.extract_strided_slice %65 {offsets = [4, 0], sizes = [4, 16], strides = [1, 1]} : vector<16x16xf32> to vector<4x16xf32>
    %68 = vector.shape_cast %6 : vector<1x16xi1> to vector<1x16xi1>
    %69 = vector.broadcast %68 : vector<1x16xi1> to vector<4x16xi1>
    %70 = arith.select %69, %66, %67 : vector<4x16xi1>, vector<4x16xf32>
    %71 = vector.extract_strided_slice %65 {offsets = [8, 0], sizes = [4, 16], strides = [1, 1]} : vector<16x16xf32> to vector<4x16xf32>
    %72 = vector.extract_strided_slice %65 {offsets = [12, 0], sizes = [4, 16], strides = [1, 1]} : vector<16x16xf32> to vector<4x16xf32>
    %73 = vector.shape_cast %6 : vector<1x16xi1> to vector<1x16xi1>
    %74 = vector.broadcast %73 : vector<1x16xi1> to vector<4x16xi1>
    %75 = arith.select %74, %71, %72 : vector<4x16xi1>, vector<4x16xf32>
    %c0_46 = arith.constant 0 : index
    %c0_47 = arith.constant 0 : index
    %c4 = arith.constant 4 : index
    %c0_48 = arith.constant 0 : index
    %76 = vector.load %arg5[%c0_46, %c0_47, %c4, %c0_48] : memref<1x4x16x16xf32, #tpu.memory_space<vmem>>, vector<1x4x1x16xf32>
    %77 = vector.shape_cast %76 : vector<1x4x1x16xf32> to vector<4x16xf32>
    %78 = arith.addf %77, %70 : vector<4x16xf32>
    %c0_49 = arith.constant 0 : index
    %c0_50 = arith.constant 0 : index
    %c4_51 = arith.constant 4 : index
    %c0_52 = arith.constant 0 : index
    %79 = vector.load %arg6[%c0_49, %c0_50, %c4_51, %c0_52] : memref<1x4x16x16xf32, #tpu.memory_space<vmem>>, vector<1x4x1x16xf32>
    %80 = vector.shape_cast %79 : vector<1x4x1x16xf32> to vector<4x16xf32>
    %81 = vector.shape_cast %78 : vector<4x16xf32> to vector<1x4x1x16xf32>
    tpu.vector_store %arg6[%c0_49, %c0_50, %c4_51, %c0_52], %81 {strides = array<i32>} : memref<1x4x16x16xf32, #tpu.memory_space<vmem>>, vector<1x4x1x16xf32>,
    %c0_53 = arith.constant 0 : index
    %c0_54 = arith.constant 0 : index
    %c5 = arith.constant 5 : index
    %c0_55 = arith.constant 0 : index
    %82 = vector.load %arg5[%c0_53, %c0_54, %c5, %c0_55] : memref<1x4x16x16xf32, #tpu.memory_space<vmem>>, vector<1x4x1x16xf32>
    %83 = vector.shape_cast %82 : vector<1x4x1x16xf32> to vector<4x16xf32>
    %84 = arith.addf %83, %75 : vector<4x16xf32>
    %c0_56 = arith.constant 0 : index
    %c0_57 = arith.constant 0 : index
    %c5_58 = arith.constant 5 : index
    %c0_59 = arith.constant 0 : index
    %85 = vector.load %arg6[%c0_56, %c0_57, %c5_58, %c0_59] : memref<1x4x16x16xf32, #tpu.memory_space<vmem>>, vector<1x4x1x16xf32>
    %86 = vector.shape_cast %85 : vector<1x4x1x16xf32> to vector<4x16xf32>
    %87 = vector.shape_cast %84 : vector<4x16xf32> to vector<1x4x1x16xf32>
    tpu.vector_store %arg6[%c0_56, %c0_57, %c5_58, %c0_59], %87 {strides = array<i32>} : memref<1x4x16x16xf32, #tpu.memory_space<vmem>>, vector<1x4x1x16xf32>,
    %c0_60 = arith.constant 0 : index
    %c3_61 = arith.constant 3 : index
    %c0_62 = arith.constant 0 : index
    %c0_63 = arith.constant 0 : index
    %88 = vector.load %arg2[%c0_60, %c3_61, %c0_62, %c0_63] : memref<1x8x8x16xf32, #tpu.memory_space<vmem>>, vector<1x1x8x16xf32>
    %89 = vector.shape_cast %88 : vector<1x1x8x16xf32> to vector<8x16xf32>
    %cst_64 = arith.constant dense<0.000000e+00> : vector<16x16xf32>
    %90 = tpu.matmul %0, %89, %cst_64 {dimension_numbers = #tpu.dot_dimension_numbers<[1], [0], [0], [1], [0, 0, 1, 1], [], []>} : vector<16x8xf32>, vector<8x16xf32>, vector<16x16xf32> -> vector<16x16xf32>
    %91 = vector.broadcast %1 : vector<16x1xf32> to vector<16x16xf32>
    %92 = arith.addf %90, %91 : vector<16x16xf32>
    %93 = vector.extract_strided_slice %92 {offsets = [0, 0], sizes = [4, 16], strides = [1, 1]} : vector<16x16xf32> to vector<4x16xf32>
    %94 = vector.extract_strided_slice %92 {offsets = [4, 0], sizes = [4, 16], strides = [1, 1]} : vector<16x16xf32> to vector<4x16xf32>
    %95 = vector.shape_cast %6 : vector<1x16xi1> to vector<1x16xi1>
    %96 = vector.broadcast %95 : vector<1x16xi1> to vector<4x16xi1>
    %97 = arith.select %96, %93, %94 : vector<4x16xi1>, vector<4x16xf32>
    %98 = vector.extract_strided_slice %92 {offsets = [8, 0], sizes = [4, 16], strides = [1, 1]} : vector<16x16xf32> to vector<4x16xf32>
    %99 = vector.extract_strided_slice %92 {offsets = [12, 0], sizes = [4, 16], strides = [1, 1]} : vector<16x16xf32> to vector<4x16xf32>
    %100 = vector.shape_cast %6 : vector<1x16xi1> to vector<1x16xi1>
    %101 = vector.broadcast %100 : vector<1x16xi1> to vector<4x16xi1>
    %102 = arith.select %101, %98, %99 : vector<4x16xi1>, vector<4x16xf32>
    %c0_65 = arith.constant 0 : index
    %c0_66 = arith.constant 0 : index
    %c6 = arith.constant 6 : index
    %c0_67 = arith.constant 0 : index
    %103 = vector.load %arg5[%c0_65, %c0_66, %c6, %c0_67] : memref<1x4x16x16xf32, #tpu.memory_space<vmem>>, vector<1x4x1x16xf32>
    %104 = vector.shape_cast %103 : vector<1x4x1x16xf32> to vector<4x16xf32>
    %105 = arith.addf %104, %97 : vector<4x16xf32>
    %c0_68 = arith.constant 0 : index
    %c0_69 = arith.constant 0 : index
    %c6_70 = arith.constant 6 : index
    %c0_71 = arith.constant 0 : index
    %106 = vector.load %arg6[%c0_68, %c0_69, %c6_70, %c0_71] : memref<1x4x16x16xf32, #tpu.memory_space<vmem>>, vector<1x4x1x16xf32>
    %107 = vector.shape_cast %106 : vector<1x4x1x16xf32> to vector<4x16xf32>
    %108 = vector.shape_cast %105 : vector<4x16xf32> to vector<1x4x1x16xf32>
    tpu.vector_store %arg6[%c0_68, %c0_69, %c6_70, %c0_71], %108 {strides = array<i32>} : memref<1x4x16x16xf32, #tpu.memory_space<vmem>>, vector<1x4x1x16xf32>,
    %c0_72 = arith.constant 0 : index
    %c0_73 = arith.constant 0 : index
    %c7 = arith.constant 7 : index
    %c0_74 = arith.constant 0 : index
    %109 = vector.load %arg5[%c0_72, %c0_73, %c7, %c0_74] : memref<1x4x16x16xf32, #tpu.memory_space<vmem>>, vector<1x4x1x16xf32>
    %110 = vector.shape_cast %109 : vector<1x4x1x16xf32> to vector<4x16xf32>
    %111 = arith.addf %110, %102 : vector<4x16xf32>
    %c0_75 = arith.constant 0 : index
    %c0_76 = arith.constant 0 : index
    %c7_77 = arith.constant 7 : index
    %c0_78 = arith.constant 0 : index
    %112 = vector.load %arg6[%c0_75, %c0_76, %c7_77, %c0_78] : memref<1x4x16x16xf32, #tpu.memory_space<vmem>>, vector<1x4x1x16xf32>
    %113 = vector.shape_cast %112 : vector<1x4x1x16xf32> to vector<4x16xf32>
    %114 = vector.shape_cast %111 : vector<4x16xf32> to vector<1x4x1x16xf32>
    tpu.vector_store %arg6[%c0_75, %c0_76, %c7_77, %c0_78], %114 {strides = array<i32>} : memref<1x4x16x16xf32, #tpu.memory_space<vmem>>, vector<1x4x1x16xf32>,
    %c0_79 = arith.constant 0 : index
    %c4_80 = arith.constant 4 : index
    %c0_81 = arith.constant 0 : index
    %c0_82 = arith.constant 0 : index
    %115 = vector.load %arg2[%c0_79, %c4_80, %c0_81, %c0_82] : memref<1x8x8x16xf32, #tpu.memory_space<vmem>>, vector<1x1x8x16xf32>
    %116 = vector.shape_cast %115 : vector<1x1x8x16xf32> to vector<8x16xf32>
    %cst_83 = arith.constant dense<0.000000e+00> : vector<16x16xf32>
    %117 = tpu.matmul %0, %116, %cst_83 {dimension_numbers = #tpu.dot_dimension_numbers<[1], [0], [0], [1], [0, 0, 1, 1], [], []>} : vector<16x8xf32>, vector<8x16xf32>, vector<16x16xf32> -> vector<16x16xf32>
    %118 = vector.broadcast %1 : vector<16x1xf32> to vector<16x16xf32>
    %119 = arith.addf %117, %118 : vector<16x16xf32>
    %120 = vector.extract_strided_slice %119 {offsets = [0, 0], sizes = [4, 16], strides = [1, 1]} : vector<16x16xf32> to vector<4x16xf32>
    %121 = vector.extract_strided_slice %119 {offsets = [4, 0], sizes = [4, 16], strides = [1, 1]} : vector<16x16xf32> to vector<4x16xf32>
    %122 = vector.shape_cast %6 : vector<1x16xi1> to vector<1x16xi1>
    %123 = vector.broadcast %122 : vector<1x16xi1> to vector<4x16xi1>
    %124 = arith.select %123, %120, %121 : vector<4x16xi1>, vector<4x16xf32>
    %125 = vector.extract_strided_slice %119 {offsets = [8, 0], sizes = [4, 16], strides = [1, 1]} : vector<16x16xf32> to vector<4x16xf32>
    %126 = vector.extract_strided_slice %119 {offsets = [12, 0], sizes = [4, 16], strides = [1, 1]} : vector<16x16xf32> to vector<4x16xf32>
    %127 = vector.shape_cast %6 : vector<1x16xi1> to vector<1x16xi1>
    %128 = vector.broadcast %127 : vector<1x16xi1> to vector<4x16xi1>
    %129 = arith.select %128, %125, %126 : vector<4x16xi1>, vector<4x16xf32>
    %c0_84 = arith.constant 0 : index
    %c0_85 = arith.constant 0 : index
    %c8 = arith.constant 8 : index
    %c0_86 = arith.constant 0 : index
    %130 = vector.load %arg5[%c0_84, %c0_85, %c8, %c0_86] : memref<1x4x16x16xf32, #tpu.memory_space<vmem>>, vector<1x4x1x16xf32>
    %131 = vector.shape_cast %130 : vector<1x4x1x16xf32> to vector<4x16xf32>
    %132 = arith.addf %131, %124 : vector<4x16xf32>
    %c0_87 = arith.constant 0 : index
    %c0_88 = arith.constant 0 : index
    %c8_89 = arith.constant 8 : index
    %c0_90 = arith.constant 0 : index
    %133 = vector.load %arg6[%c0_87, %c0_88, %c8_89, %c0_90] : memref<1x4x16x16xf32, #tpu.memory_space<vmem>>, vector<1x4x1x16xf32>
    %134 = vector.shape_cast %133 : vector<1x4x1x16xf32> to vector<4x16xf32>
    %135 = vector.shape_cast %132 : vector<4x16xf32> to vector<1x4x1x16xf32>
    tpu.vector_store %arg6[%c0_87, %c0_88, %c8_89, %c0_90], %135 {strides = array<i32>} : memref<1x4x16x16xf32, #tpu.memory_space<vmem>>, vector<1x4x1x16xf32>,
    %c0_91 = arith.constant 0 : index
    %c0_92 = arith.constant 0 : index
    %c9 = arith.constant 9 : index
    %c0_93 = arith.constant 0 : index
    %136 = vector.load %arg5[%c0_91, %c0_92, %c9, %c0_93] : memref<1x4x16x16xf32, #tpu.memory_space<vmem>>, vector<1x4x1x16xf32>
    %137 = vector.shape_cast %136 : vector<1x4x1x16xf32> to vector<4x16xf32>
    %138 = arith.addf %137, %129 : vector<4x16xf32>
    %c0_94 = arith.constant 0 : index
    %c0_95 = arith.constant 0 : index
    %c9_96 = arith.constant 9 : index
    %c0_97 = arith.constant 0 : index
    %139 = vector.load %arg6[%c0_94, %c0_95, %c9_96, %c0_97] : memref<1x4x16x16xf32, #tpu.memory_space<vmem>>, vector<1x4x1x16xf32>
    %140 = vector.shape_cast %139 : vector<1x4x1x16xf32> to vector<4x16xf32>
    %141 = vector.shape_cast %138 : vector<4x16xf32> to vector<1x4x1x16xf32>
    tpu.vector_store %arg6[%c0_94, %c0_95, %c9_96, %c0_97], %141 {strides = array<i32>} : memref<1x4x16x16xf32, #tpu.memory_space<vmem>>, vector<1x4x1x16xf32>,
    %c0_98 = arith.constant 0 : index
    %c5_99 = arith.constant 5 : index
    %c0_100 = arith.constant 0 : index
    %c0_101 = arith.constant 0 : index
    %142 = vector.load %arg2[%c0_98, %c5_99, %c0_100, %c0_101] : memref<1x8x8x16xf32, #tpu.memory_space<vmem>>, vector<1x1x8x16xf32>
    %143 = vector.shape_cast %142 : vector<1x1x8x16xf32> to vector<8x16xf32>
    %cst_102 = arith.constant dense<0.000000e+00> : vector<16x16xf32>
    %144 = tpu.matmul %0, %143, %cst_102 {dimension_numbers = #tpu.dot_dimension_numbers<[1], [0], [0], [1], [0, 0, 1, 1], [], []>} : vector<16x8xf32>, vector<8x16xf32>, vector<16x16xf32> -> vector<16x16xf32>
    %145 = vector.broadcast %1 : vector<16x1xf32> to vector<16x16xf32>
    %146 = arith.addf %144, %145 : vector<16x16xf32>
    %147 = vector.extract_strided_slice %146 {offsets = [0, 0], sizes = [4, 16], strides = [1, 1]} : vector<16x16xf32> to vector<4x16xf32>
    %148 = vector.extract_strided_slice %146 {offsets = [4, 0], sizes = [4, 16], strides = [1, 1]} : vector<16x16xf32> to vector<4x16xf32>
    %149 = vector.shape_cast %6 : vector<1x16xi1> to vector<1x16xi1>
    %150 = vector.broadcast %149 : vector<1x16xi1> to vector<4x16xi1>
    %151 = arith.select %150, %147, %148 : vector<4x16xi1>, vector<4x16xf32>
    %152 = vector.extract_strided_slice %146 {offsets = [8, 0], sizes = [4, 16], strides = [1, 1]} : vector<16x16xf32> to vector<4x16xf32>
    %153 = vector.extract_strided_slice %146 {offsets = [12, 0], sizes = [4, 16], strides = [1, 1]} : vector<16x16xf32> to vector<4x16xf32>
    %154 = vector.shape_cast %6 : vector<1x16xi1> to vector<1x16xi1>
    %155 = vector.broadcast %154 : vector<1x16xi1> to vector<4x16xi1>
    %156 = arith.select %155, %152, %153 : vector<4x16xi1>, vector<4x16xf32>
    %c0_103 = arith.constant 0 : index
    %c0_104 = arith.constant 0 : index
    %c10 = arith.constant 10 : index
    %c0_105 = arith.constant 0 : index
    %157 = vector.load %arg5[%c0_103, %c0_104, %c10, %c0_105] : memref<1x4x16x16xf32, #tpu.memory_space<vmem>>, vector<1x4x1x16xf32>
    %158 = vector.shape_cast %157 : vector<1x4x1x16xf32> to vector<4x16xf32>
    %159 = arith.addf %158, %151 : vector<4x16xf32>
    %c0_106 = arith.constant 0 : index
    %c0_107 = arith.constant 0 : index
    %c10_108 = arith.constant 10 : index
    %c0_109 = arith.constant 0 : index
    %160 = vector.load %arg6[%c0_106, %c0_107, %c10_108, %c0_109] : memref<1x4x16x16xf32, #tpu.memory_space<vmem>>, vector<1x4x1x16xf32>
    %161 = vector.shape_cast %160 : vector<1x4x1x16xf32> to vector<4x16xf32>
    %162 = vector.shape_cast %159 : vector<4x16xf32> to vector<1x4x1x16xf32>
    tpu.vector_store %arg6[%c0_106, %c0_107, %c10_108, %c0_109], %162 {strides = array<i32>} : memref<1x4x16x16xf32, #tpu.memory_space<vmem>>, vector<1x4x1x16xf32>,
    %c0_110 = arith.constant 0 : index
    %c0_111 = arith.constant 0 : index
    %c11 = arith.constant 11 : index
    %c0_112 = arith.constant 0 : index
    %163 = vector.load %arg5[%c0_110, %c0_111, %c11, %c0_112] : memref<1x4x16x16xf32, #tpu.memory_space<vmem>>, vector<1x4x1x16xf32>
    %164 = vector.shape_cast %163 : vector<1x4x1x16xf32> to vector<4x16xf32>
    %165 = arith.addf %164, %156 : vector<4x16xf32>
    %c0_113 = arith.constant 0 : index
    %c0_114 = arith.constant 0 : index
    %c11_115 = arith.constant 11 : index
    %c0_116 = arith.constant 0 : index
    %166 = vector.load %arg6[%c0_113, %c0_114, %c11_115, %c0_116] : memref<1x4x16x16xf32, #tpu.memory_space<vmem>>, vector<1x4x1x16xf32>
    %167 = vector.shape_cast %166 : vector<1x4x1x16xf32> to vector<4x16xf32>
    %168 = vector.shape_cast %165 : vector<4x16xf32> to vector<1x4x1x16xf32>
    tpu.vector_store %arg6[%c0_113, %c0_114, %c11_115, %c0_116], %168 {strides = array<i32>} : memref<1x4x16x16xf32, #tpu.memory_space<vmem>>, vector<1x4x1x16xf32>,
    %c0_117 = arith.constant 0 : index
    %c6_118 = arith.constant 6 : index
    %c0_119 = arith.constant 0 : index
    %c0_120 = arith.constant 0 : index
    %169 = vector.load %arg2[%c0_117, %c6_118, %c0_119, %c0_120] : memref<1x8x8x16xf32, #tpu.memory_space<vmem>>, vector<1x1x8x16xf32>
    %170 = vector.shape_cast %169 : vector<1x1x8x16xf32> to vector<8x16xf32>
    %cst_121 = arith.constant dense<0.000000e+00> : vector<16x16xf32>
    %171 = tpu.matmul %0, %170, %cst_121 {dimension_numbers = #tpu.dot_dimension_numbers<[1], [0], [0], [1], [0, 0, 1, 1], [], []>} : vector<16x8xf32>, vector<8x16xf32>, vector<16x16xf32> -> vector<16x16xf32>
    %172 = vector.broadcast %1 : vector<16x1xf32> to vector<16x16xf32>
    %173 = arith.addf %171, %172 : vector<16x16xf32>
    %174 = vector.extract_strided_slice %173 {offsets = [0, 0], sizes = [4, 16], strides = [1, 1]} : vector<16x16xf32> to vector<4x16xf32>
    %175 = vector.extract_strided_slice %173 {offsets = [4, 0], sizes = [4, 16], strides = [1, 1]} : vector<16x16xf32> to vector<4x16xf32>
    %176 = vector.shape_cast %6 : vector<1x16xi1> to vector<1x16xi1>
    %177 = vector.broadcast %176 : vector<1x16xi1> to vector<4x16xi1>
    %178 = arith.select %177, %174, %175 : vector<4x16xi1>, vector<4x16xf32>
    %179 = vector.extract_strided_slice %173 {offsets = [8, 0], sizes = [4, 16], strides = [1, 1]} : vector<16x16xf32> to vector<4x16xf32>
    %180 = vector.extract_strided_slice %173 {offsets = [12, 0], sizes = [4, 16], strides = [1, 1]} : vector<16x16xf32> to vector<4x16xf32>
    %181 = vector.shape_cast %6 : vector<1x16xi1> to vector<1x16xi1>
    %182 = vector.broadcast %181 : vector<1x16xi1> to vector<4x16xi1>
    %183 = arith.select %182, %179, %180 : vector<4x16xi1>, vector<4x16xf32>
    %c0_122 = arith.constant 0 : index
    %c0_123 = arith.constant 0 : index
    %c12 = arith.constant 12 : index
    %c0_124 = arith.constant 0 : index
    %184 = vector.load %arg5[%c0_122, %c0_123, %c12, %c0_124] : memref<1x4x16x16xf32, #tpu.memory_space<vmem>>, vector<1x4x1x16xf32>
    %185 = vector.shape_cast %184 : vector<1x4x1x16xf32> to vector<4x16xf32>
    %186 = arith.addf %185, %178 : vector<4x16xf32>
    %c0_125 = arith.constant 0 : index
    %c0_126 = arith.constant 0 : index
    %c12_127 = arith.constant 12 : index
    %c0_128 = arith.constant 0 : index
    %187 = vector.load %arg6[%c0_125, %c0_126, %c12_127, %c0_128] : memref<1x4x16x16xf32, #tpu.memory_space<vmem>>, vector<1x4x1x16xf32>
    %188 = vector.shape_cast %187 : vector<1x4x1x16xf32> to vector<4x16xf32>
    %189 = vector.shape_cast %186 : vector<4x16xf32> to vector<1x4x1x16xf32>
    tpu.vector_store %arg6[%c0_125, %c0_126, %c12_127, %c0_128], %189 {strides = array<i32>} : memref<1x4x16x16xf32, #tpu.memory_space<vmem>>, vector<1x4x1x16xf32>,
    %c0_129 = arith.constant 0 : index
    %c0_130 = arith.constant 0 : index
    %c13 = arith.constant 13 : index
    %c0_131 = arith.constant 0 : index
    %190 = vector.load %arg5[%c0_129, %c0_130, %c13, %c0_131] : memref<1x4x16x16xf32, #tpu.memory_space<vmem>>, vector<1x4x1x16xf32>
    %191 = vector.shape_cast %190 : vector<1x4x1x16xf32> to vector<4x16xf32>
    %192 = arith.addf %191, %183 : vector<4x16xf32>
    %c0_132 = arith.constant 0 : index
    %c0_133 = arith.constant 0 : index
    %c13_134 = arith.constant 13 : index
    %c0_135 = arith.constant 0 : index
    %193 = vector.load %arg6[%c0_132, %c0_133, %c13_134, %c0_135] : memref<1x4x16x16xf32, #tpu.memory_space<vmem>>, vector<1x4x1x16xf32>
    %194 = vector.shape_cast %193 : vector<1x4x1x16xf32> to vector<4x16xf32>
    %195 = vector.shape_cast %192 : vector<4x16xf32> to vector<1x4x1x16xf32>
    tpu.vector_store %arg6[%c0_132, %c0_133, %c13_134, %c0_135], %195 {strides = array<i32>} : memref<1x4x16x16xf32, #tpu.memory_space<vmem>>, vector<1x4x1x16xf32>,
    %c0_136 = arith.constant 0 : index
    %c7_137 = arith.constant 7 : index
    %c0_138 = arith.constant 0 : index
    %c0_139 = arith.constant 0 : index
    %196 = vector.load %arg2[%c0_136, %c7_137, %c0_138, %c0_139] : memref<1x8x8x16xf32, #tpu.memory_space<vmem>>, vector<1x1x8x16xf32>
    %197 = vector.shape_cast %196 : vector<1x1x8x16xf32> to vector<8x16xf32>
    %cst_140 = arith.constant dense<0.000000e+00> : vector<16x16xf32>
    %198 = tpu.matmul %0, %197, %cst_140 {dimension_numbers = #tpu.dot_dimension_numbers<[1], [0], [0], [1], [0, 0, 1, 1], [], []>} : vector<16x8xf32>, vector<8x16xf32>, vector<16x16xf32> -> vector<16x16xf32>
    %199 = vector.broadcast %1 : vector<16x1xf32> to vector<16x16xf32>
    %200 = arith.addf %198, %199 : vector<16x16xf32>
    %201 = vector.extract_strided_slice %200 {offsets = [0, 0], sizes = [4, 16], strides = [1, 1]} : vector<16x16xf32> to vector<4x16xf32>
    %202 = vector.extract_strided_slice %200 {offsets = [4, 0], sizes = [4, 16], strides = [1, 1]} : vector<16x16xf32> to vector<4x16xf32>
    %203 = vector.shape_cast %6 : vector<1x16xi1> to vector<1x16xi1>
    %204 = vector.broadcast %203 : vector<1x16xi1> to vector<4x16xi1>
    %205 = arith.select %204, %201, %202 : vector<4x16xi1>, vector<4x16xf32>
    %206 = vector.extract_strided_slice %200 {offsets = [8, 0], sizes = [4, 16], strides = [1, 1]} : vector<16x16xf32> to vector<4x16xf32>
    %207 = vector.extract_strided_slice %200 {offsets = [12, 0], sizes = [4, 16], strides = [1, 1]} : vector<16x16xf32> to vector<4x16xf32>
    %208 = vector.shape_cast %6 : vector<1x16xi1> to vector<1x16xi1>
    %209 = vector.broadcast %208 : vector<1x16xi1> to vector<4x16xi1>
    %210 = arith.select %209, %206, %207 : vector<4x16xi1>, vector<4x16xf32>
    %c0_141 = arith.constant 0 : index
    %c0_142 = arith.constant 0 : index
    %c14 = arith.constant 14 : index
    %c0_143 = arith.constant 0 : index
    %211 = vector.load %arg5[%c0_141, %c0_142, %c14, %c0_143] : memref<1x4x16x16xf32, #tpu.memory_space<vmem>>, vector<1x4x1x16xf32>
    %212 = vector.shape_cast %211 : vector<1x4x1x16xf32> to vector<4x16xf32>
    %213 = arith.addf %212, %205 : vector<4x16xf32>
    %c0_144 = arith.constant 0 : index
    %c0_145 = arith.constant 0 : index
    %c14_146 = arith.constant 14 : index
    %c0_147 = arith.constant 0 : index
    %214 = vector.load %arg6[%c0_144, %c0_145, %c14_146, %c0_147] : memref<1x4x16x16xf32, #tpu.memory_space<vmem>>, vector<1x4x1x16xf32>
    %215 = vector.shape_cast %214 : vector<1x4x1x16xf32> to vector<4x16xf32>
    %216 = vector.shape_cast %213 : vector<4x16xf32> to vector<1x4x1x16xf32>
    tpu.vector_store %arg6[%c0_144, %c0_145, %c14_146, %c0_147], %216 {strides = array<i32>} : memref<1x4x16x16xf32, #tpu.memory_space<vmem>>, vector<1x4x1x16xf32>,
    %c0_148 = arith.constant 0 : index
    %c0_149 = arith.constant 0 : index
    %c15 = arith.constant 15 : index
    %c0_150 = arith.constant 0 : index
    %217 = vector.load %arg5[%c0_148, %c0_149, %c15, %c0_150] : memref<1x4x16x16xf32, #tpu.memory_space<vmem>>, vector<1x4x1x16xf32>
    %218 = vector.shape_cast %217 : vector<1x4x1x16xf32> to vector<4x16xf32>
    %219 = arith.addf %218, %210 : vector<4x16xf32>
    %c0_151 = arith.constant 0 : index
    %c0_152 = arith.constant 0 : index
    %c15_153 = arith.constant 15 : index
    %c0_154 = arith.constant 0 : index
    %220 = vector.load %arg6[%c0_151, %c0_152, %c15_153, %c0_154] : memref<1x4x16x16xf32, #tpu.memory_space<vmem>>, vector<1x4x1x16xf32>
    %221 = vector.shape_cast %220 : vector<1x4x1x16xf32> to vector<4x16xf32>
    %222 = vector.shape_cast %219 : vector<4x16xf32> to vector<1x4x1x16xf32>
    tpu.vector_store %arg6[%c0_151, %c0_152, %c15_153, %c0_154], %222 {strides = array<i32>} : memref<1x4x16x16xf32, #tpu.memory_space<vmem>>, vector<1x4x1x16xf32>,
    return
  }
  func.func @transform_0(%arg0: i32, %arg1: i32) -> (i32, i32, i32, i32) {
    %c0_i32 = arith.constant 0 : i32
    %0 = arith.minsi %arg1, %c0_i32 : i32
    %c0_i32_0 = arith.constant 0 : i32
    %c0_i32_1 = arith.constant 0 : i32
    %c0_i32_2 = arith.constant 0 : i32
    return %arg0, %0, %c0_i32_0, %c0_i32_1 : i32, i32, i32, i32
  }
  func.func @transform_1(%arg0: i32, %arg1: i32) -> (i32, i32) {
    %c0_i32 = arith.constant 0 : i32
    %c0_i32_0 = arith.constant 0 : i32
    %c0_i32_1 = arith.constant 0 : i32
    return %c0_i32, %c0_i32_0 : i32, i32
  }
  func.func @transform_2(%arg0: i32, %arg1: i32) -> (i32, i32) {
    %c0_i32 = arith.constant 0 : i32
    %c0_i32_0 = arith.constant 0 : i32
    %c0_i32_1 = arith.constant 0 : i32
    return %c0_i32, %c0_i32_0 : i32, i32
  }
  func.func @transform_3(%arg0: i32, %arg1: i32) -> (i32, i32, i32, i32) {
    %c0_i32 = arith.constant 0 : i32
    %c0_i32_0 = arith.constant 0 : i32
    %c0_i32_1 = arith.constant 0 : i32
    return %arg0, %c0_i32, %arg1, %c0_i32_0 : i32, i32, i32, i32
  }
  func.func @transform_4(%arg0: i32, %arg1: i32) -> (i32, i32, i32, i32) {
    %c0_i32 = arith.constant 0 : i32
    %c0_i32_0 = arith.constant 0 : i32
    %c0_i32_1 = arith.constant 0 : i32
    return %arg0, %c0_i32, %arg1, %c0_i32_0 : i32, i32, i32, i32
  }
}

</mosaic_0001>

<bundles_post_ra>
// kernel: tile.8
= control target key start
LH: loop header
LB: loop body
LE: loop exit
PB: predicated region body
PF: predicated region fallthrough
CT: control target
= control target key end

     0   :  { %s22_s0 = inlined_call_operand.vmem [shape: f32[4], index: 0, kind: input, shape index: {}]   ;;  %s23_s1 = inlined_call_operand.vmem [shape: f32[4,4], index: 1, kind: output, shape index: {}]  }
   0x1   :  { %v4_v0 = vld [vmem:[%s22_s0] ss:$0 sm:$0xff] }
   0x2   :  { %5 = vst [vmem:[%s23_s1] sm:$0xf] %v4_v0 }

// kernel: tile.0
= control target key start
LH: loop header
LB: loop body
LE: loop exit
PB: predicated region body
PF: predicated region fallthrough
CT: control target
= control target key end

     0   :  { %s34_s8 = smov 125   ;;  %s35_s9 = smov 126   ;;  %vm7_vm0 = vcmask 7168   ;;  %s61_s0 = inlined_call_operand.vmem [shape: f32[4,4], index: 0, kind: input, shape index: {}]   ;;  %s62_s1 = inlined_call_operand.vmem [shape: f32[16,1], index: 1, kind: output, shape index: {}]  }
   0x1   :  { %v4_v0 = vld [vmem:[%s61_s0] sm:$0xf]  ;;  %s33_s0 = smov 127  }
   0x2   :  { %5 = vst [vmem:[#allocation0] sm:$0xf] %v4_v0 }
   0x9   :  { %v9_v1 = vld [vmem:[#allocation0] sm:$0xf]  }
   0xa   :  { %v21_v2 = vld [vmem:[#allocation0] sm:$0xf]   ;;  %10 = vrot.lane.b32.xlu0 %v9_v1, %s33_s0 }
   0xb   :  { %22 = vrot.lane.b32.xlu1 %v21_v2, %s34_s8  ;;  %v15_v3 = vld [vmem:[#allocation0] sm:$0xf]  }
   0xc   :  { %v6_v4 = vld [vmem:[#allocation0] sm:$0xf]  }
   0xd   :  { %8 = vst.msk [vmem:[%s62_s1] ss:$4 sm:$0xf] %vm7_vm0, %v6_v4  }
  0x12   :  { %16 = vrot.lane.b32.xlu0 %v15_v3, %s35_s9 }
  0x7c   :  { %v11_v5 = vpop.permute.xlu0 %10  }
  0x7d   :  { %v23_v6 = vpop.permute.xlu1 %22   ;;  %27 = vst.msk [vmem:[%s62_s1 + $0x1] ss:$4 sm:$0xf] %vm7_vm0, %v11_v5  }
  0x7e   :  { %29 = vst.msk [vmem:[%s62_s1 + $0x3] ss:$4 sm:$0xf] %vm7_vm0, %v23_v6  }
  0x84   :  { %v17_v7 = vpop.permute.xlu0 %16  }
  0x85   :  { %28 = vst.msk [vmem:[%s62_s1 + $0x2] ss:$4 sm:$0xf] %vm7_vm0, %v17_v7  }

// kernel: up_forward.1
= control target key start
LH: loop header
LB: loop body
LE: loop exit
PB: predicated region body
PF: predicated region fallthrough
CT: control target
= control target key end

     0   :  { %9 = vsyncpa [#allocation3], 0  ;;  %s1603_s0 = inlined_call_operand.vmem [shape: f32[2,8,8,16], index: 0, kind: input, shape index: {}]   ;;  %s1604_s1 = inlined_call_operand.vmem [shape: f32[16,8], index: 1, kind: input, shape index: {}]   ;;  %s1605_s2 = inlined_call_operand.vmem [shape: f32[16,1], index: 2, kind: input, shape index: {}]   ;;  %s1606_s3 = inlined_call_operand.vmem [shape: f32[2,4,16,16], index: 3, kind: input, shape index: {}]   ;;  %s1607_s4 = inlined_call_operand.hbm [shape: f32[2,4,16,16], index: 4, kind: output, shape index: {}]  }
   0x1   :  { %11 = vsyncpa [#allocation3 + $0x1], 0  ;;  %s1211_s15 = smov 0   ;;  %s1213_s16 = smov 0  }
   0x2   :  { %s1215_s17 = smov 0   ;;  %s1217_s18 = smov 0  }
   0x3   :  { %s1219_s19 = smov 0   ;;  %s1221_s20 = smov 0  }
   0x4 LB: > { %s1003_s21 = sadd.s32 4294967295, %s1181_s20   ;;  %s1004_s22 = sadd.s32 4294967294, %s1181_s20   ;;  %s1181_s20 = sphi %s1221_s20, %s17_s20   ;;  %s1177_s19 = sphi %s1219_s19, %s1616_s19   ;;  %s1173_s18 = sphi %s1217_s18, %s1615_s18   ;;  %s1169_s17 = sphi %s1215_s17, %s1614_s17   ;;  %s1165_s16 = sphi %s1213_s16, %s1613_s16   ;;  %s1161_s15 = sphi %s1211_s15, %s1612_s15  }
   0x5   : > { %s29_s23 = sadd.s32 1, %s1177_s19  ;;  %s140_s24 = sadd.s32 1, %s1169_s17 }
   0x6   : > { %p31_p0 = scmp.ge.s32.totalorder %s29_s23, 2  ;;  %p150_p1 = scmp.ne.s32.totalorder %s1169_s17, %s1165_s16 }
   0x7   : > { %p151_p2 = scmp.eq.s32.totalorder %s1003_s21, 1  ;;  %p156_p3 = scmp.ne.s32.totalorder %s1165_s16, %s1161_s15 }
   0x8   : > { %s1618_s23 = smov (%p31_p0, %s29_s23), 0  ;;  %p157_p5 = scmp.eq.s32.totalorder %s1004_s22, 1 }
   0x9   : > { %p1251_p4 = por %p151_p2, %p150_p1  ;;  %s135_s26 = ssub.s32 %s1177_s19, %s1618_s23 }
   0xa   : > { %p1007_p6 = scmp.ge.s32.totalorder %s1181_s20, 1  ;;  %p138_p7 = scmp.eq.s32.totalorder %s135_s26, 0 }
   0xb   : > { %p1258_p8 = por %p157_p5, %p156_p3  ;;  %p211_p9 = scmp.lt.s32.totalorder %s1181_s20, 3 }
   0xc   : > { %s1264_s28 = scalar_select %p138_p7, %s1169_s17, %s140_s24  }
   0xd   : > { %p212_p10 = pnand %p1007_p6, %p211_p9 }
   0xe   : > { %p255_p11 = scmp.lt.s32.totalorder (!%p212_p10), %s1173_s18, 1  ;;  %s249_s22 = sand.u32 (!%p212_p10), 1, %s1165_s16  }
   0xf   : > { %215 = sbr.rel (%p212_p10) target bundleno = 227 (0xe3), region = 36  ;;  %s1008_s30 = sshll.u32 (!%p212_p10), %s249_s22, 6 }
  0x10   : > { %s889_s11 = scalar_lea.sflag (!%p212_p10), [#allocation3], %s249_s22  ;;  %s1123_s24 = scalar_lea.hbm (!%p212_p10), %s1607_s4, 128 }
  0x14   : > { %v279_v0 = vld [vmem:[%s1605_s2] sm:$0xff]  ;;  %v1183_v1 = vmov 0   ;;  %s1271_s5 = scalar_select %p255_p11, %s1173_s18, 1  ;;  %vm296_vm0 = vcmask 64512   ;;  %v280_v11 = vld [vmem:[%s1605_s2 + $0x8] sm:$0xff]  ;;  %v281_v13 = vlaneseq  ;;  %vm352_vm2 = vcmask 122880  }
  0x15   : > { %1102 = vset.pattern.permute.xlu0 %v1183_v1  ;;  %v277_v2 = vld [vmem:[%s1604_s1] sm:$0xff]  ;;  %v278_v12 = vld [vmem:[%s1604_s1 + $0x8] sm:$0xff] }
  0x16   : > { %288 = vperm.xlu0 %1102, %v279_v0   ;;  %s1041_s6 = sshll.u32 %s1271_s5, 6  ;;  %v282_v14 = vand.u32 127, %v281_v13  ;;  %s1335_s5 = scalar_lea.vmem [#allocation2], %s1008_s30 }
  0x17   : > { %s262_s9 = scalar_lea.vmem %s1603_s0, %s1041_s6  ;;  %s1312_s29 = scalar_lea.vmem %s1606_s3, %s1041_s6 }
  0x18   : > { %v285_v3 = vld [vmem:[%s262_s9] sm:$0xff]  ;;  %v1015_v4 = vld [vmem:[%s262_s9 + $0x8] sm:$0xff]  ;;  %v1018_v5 = vld [vmem:[%s262_s9 + $0x10] sm:$0xff]  ;;  %v283_v16 = vand.u32 1, %v282_v14  ;;  %s1043_s6 = sshll.u32 %s1173_s18, 6 }
  0x19   : > { %318 = vmatpush.msra.mxu0 %v285_v3  ;;  %394 = vmatpush.msra.mxu1 %v1015_v4  ;;  %v1021_v6 = vld [vmem:[%s262_s9 + $0x18] sm:$0xff]  ;;  %v1030_v7 = vld [vmem:[%s262_s9 + $0x30] sm:$0xff]  ;;  %v1024_v9 = vld [vmem:[%s262_s9 + $0x20] sm:$0xff]  ;;  %s902_s8 = scalar_lea.hbm %s1607_s4, %s1043_s6 }
  0x1a   : > { %467 = vmatpush.msra.mxu2 %v1018_v5  ;;  %540 = vmatpush.msra.mxu3 %v1021_v6  ;;  %v1033_v8 = vld [vmem:[%s262_s9 + $0x38] sm:$0xff]  ;;  %v1027_v10 = vld [vmem:[%s262_s9 + $0x28] sm:$0xff]  ;;  %vm1318_vm1 = vcmp.eq.s32.totalorder %v283_v16, 0  ;;  %v336_v23 = vld [vmem:[%s1312_s29] sm:$0x1]  ;;  %s903_s9 = sshll.u32 %s1335_s5, 4  ;;  %s904_s9 = int_to_ptr.vmem [resolvable:$true] %s903_s9 }
  0x1b   : > { %1013 = vmatmul.msk.f32.vlgmr.msra.gmra.mxu0 %vm296_vm0, %v277_v2  ;;  %1016 = vmatmul.msk.f32.vlgmr.msra.gmra.mxu1 %vm296_vm0, %v277_v2  ;;  %v410_v25 = vld [vmem:[%s1312_s29 + $0x2] sm:$0x1]  ;;  %v337_v27 = vld [vmem:[%s1312_s29 + $0x10] sm:$0x1]  ;;  %v338_v28 = vld [vmem:[%s1312_s29 + $0x20] sm:$0x1] }
  0x1c   : > { %1019 = vmatmul.msk.f32.vlgmr.msra.gmra.mxu2 %vm296_vm0, %v277_v2  ;;  %1022 = vmatmul.msk.f32.vlgmr.msra.gmra.mxu3 %vm296_vm0, %v277_v2  ;;  %v339_v29 = vld [vmem:[%s1312_s29 + $0x30] sm:$0x1]  ;;  %v411_v35 = vld [vmem:[%s1312_s29 + $0x12] sm:$0x1]  ;;  %v412_v37 = vld [vmem:[%s1312_s29 + $0x22] sm:$0x1] }
  0x1d   : > { %759 = vmatpush.msrb.mxu2 %v1030_v7  ;;  %832 = vmatpush.msrb.mxu3 %v1033_v8  ;;  %v413_v47 = vld [vmem:[%s1312_s29 + $0x32] sm:$0x1]  ;;  %v483_v50 = vld [vmem:[%s1312_s29 + $0x4] sm:$0x1]  ;;  %v484_v56 = vld [vmem:[%s1312_s29 + $0x14] sm:$0x1] }
  0x1e   : > { %613 = vmatpush.msrb.mxu0 %v1024_v9  ;;  %686 = vmatpush.msrb.mxu1 %v1027_v10  ;;  %v485_v57 = vld [vmem:[%s1312_s29 + $0x24] sm:$0x1]  ;;  %v486_v61 = vld [vmem:[%s1312_s29 + $0x34] sm:$0x1]  ;;  %v556_v0 = vld [vmem:[%s1312_s29 + $0x6] sm:$0x1] }
  0x1f   : > { %293 = vperm.xlu0 %1102, %v280_v11   ;;  %v557_v7 = vld [vmem:[%s1312_s29 + $0x16] sm:$0x1]  ;;  %v558_v13 = vld [vmem:[%s1312_s29 + $0x26] sm:$0x1]  ;;  %s905_s10 = sshll.u32 %s902_s8, 4  ;;  %s906_s10 = int_to_ptr.hbm [resolvable:$true] %s905_s10 }
  0x20   : > { %v559_v16 = vld [vmem:[%s1312_s29 + $0x36] sm:$0x1]  ;;  %s1117_s12 = sshra.s32 %s906_s10, 4  ;;  %s1118_s12 = int_to_ptr.hbm [resolvable:$true] %s1117_s12 }
  0x21   : > { %s1119_s13 = scalar_lea.hbm %s1118_s12, 64  ;;  %p1124_p1 = scmp.lt.s32.totalorder %s1118_s12, %s1607_s4 }
  0x22   : > { %p1120_p12 = scmp.ne.s32.totalorder %s1118_s12, %s1119_s13  ;;  %p1125_p2 = scmp.lt.s32.totalorder %s1123_s24, %s1119_s13 }
  0x23   : > { %1014 = vmatmul.msk.f32.gmra.mxu0 %vm296_vm0, %v278_v12  ;;  %1017 = vmatmul.msk.f32.gmra.mxu1 %vm296_vm0, %v278_v12 }
  0x24   : > { %1020 = vmatmul.msk.f32.gmra.mxu2 %vm296_vm0, %v278_v12  ;;  %1023 = vmatmul.msk.f32.gmra.mxu3 %vm296_vm0, %v278_v12  ;;  %p1121_p13 = pnand %p1120_p12, %p1251_p4  ;;  %p1126_p3 = por %p1125_p2, %p1124_p1 }
  0x26   : > { %p1122_p0 = pneg %p1121_p13 }
  0x28   : > { %p1127_p5 = pnand %p1126_p3, %p1122_p0 }
  0x2b   : > { %1025 = vmatmul.msk.f32.vlgmr.msrb.gmra.mxu0 %vm296_vm0, %v277_v2  ;;  %1028 = vmatmul.msk.f32.vlgmr.msrb.gmra.mxu1 %vm296_vm0, %v277_v2 }
  0x2c   : > { %1031 = vmatmul.msk.f32.vlgmr.msrb.gmra.mxu2 %vm296_vm0, %v277_v2  ;;  %1034 = vmatmul.msk.f32.vlgmr.msrb.gmra.mxu3 %vm296_vm0, %v277_v2 }
  0x33   : > { %1026 = vmatmul.msk.f32.gmra.mxu0 %vm296_vm0, %v278_v12  ;;  %1029 = vmatmul.msk.f32.gmra.mxu1 %vm296_vm0, %v278_v12 }
  0x34   : > { %1032 = vmatmul.msk.f32.gmra.mxu2 %vm296_vm0, %v278_v12  ;;  %1035 = vmatmul.msk.f32.gmra.mxu3 %vm296_vm0, %v278_v12 }
  0x88   : > { %v1304_v15 = vpop.permute.xlu0 %288 }
  0x91   : > { %v1332_v36 = vpop.permute.xlu0 %293 }
  0x98   : > { %v320_v17 = vpop.f32.mrf.mxu0  ;;  %v396_v18 = vpop.f32.mrf.mxu1 }
  0x99   : > { %v321_v19 = vadd.f32 %v320_v17, %v1304_v15  ;;  %v397_v20 = vadd.f32 %v396_v18, %v1304_v15 }
  0x9b   : > { %v329_v22 = vrot.slane %v321_v19, 4  ;;  %v403_v24 = vrot.slane %v397_v20, 4 }
  0x9d   : > { %v331_v26 = vsel %vm1318_vm1, %v321_v19, %v329_v22  ;;  %v405_v30 = vsel %vm1318_vm1, %v397_v20, %v403_v24  ;;  %v357_v22 = vld [vmem:[%s1312_s29 + $0x1] sm:$0x1] }
  0x9e   : > { %v341_v31 = vrot.slane %v331_v26, 1  ;;  %v342_v32 = vrot.slane %v331_v26, 2  ;;  %v343_v33 = vrot.slane %v331_v26, 3  ;;  %v348_v34 = vadd.f32 %v336_v23, %v331_v26 }
  0x9f   : > { %v415_v38 = vrot.slane %v405_v30, 1  ;;  %v416_v39 = vrot.slane %v405_v30, 2  ;;  %v417_v40 = vrot.slane %v405_v30, 3  ;;  %v422_v41 = vadd.f32 %v410_v25, %v405_v30  ;;  %v469_v42 = vpop.f32.mrf.mxu2  ;;  %v542_v43 = vpop.f32.mrf.mxu3 }
  0xa0   : > { %v349_v44 = vadd.f32 %v341_v31, %v337_v27  ;;  %v350_v45 = vadd.f32 %v342_v32, %v338_v28  ;;  %v351_v46 = vadd.f32 %v343_v33, %v339_v29  ;;  %353 = vst.msk [vmem:[%s1335_s5] sm:$0x1] %vm352_vm2, %v348_v34  ;;  %v470_v48 = vadd.f32 %v469_v42, %v1304_v15  ;;  %v323_v52 = vpop.f32.mrf.mxu0  ;;  %v399_v53 = vpop.f32.mrf.mxu1  ;;  %v358_v28 = vld [vmem:[%s1312_s29 + $0x11] sm:$0x1]  ;;  %v359_v29 = vld [vmem:[%s1312_s29 + $0x21] sm:$0x1] }
  0xa1   : > { %v423_v49 = vadd.f32 %v415_v38, %v411_v35  ;;  %426 = vst.msk [vmem:[%s1335_s5 + $0x2] sm:$0x1] %vm352_vm2, %v422_v41  ;;  %v543_v51 = vadd.f32 %v542_v43, %v1304_v15  ;;  %v424_v54 = vadd.f32 %v416_v39, %v412_v37  ;;  %v324_v58 = vadd.f32 %v323_v52, %v1332_v36  ;;  %v360_v33 = vld [vmem:[%s1312_s29 + $0x31] sm:$0x1]  ;;  %v430_v35 = vld [vmem:[%s1312_s29 + $0x3] sm:$0x1] }
  0xa2   : > { %354 = vst.msk [vmem:[%s1335_s5 + $0x10] sm:$0x1] %vm352_vm2, %v349_v44  ;;  %v476_v55 = vrot.slane %v470_v48, 4  ;;  %v400_v59 = vadd.f32 %v399_v53, %v1332_v36  ;;  %v425_v60 = vadd.f32 %v417_v40, %v413_v47  ;;  %v431_v41 = vld [vmem:[%s1312_s29 + $0x13] sm:$0x1] }
  0xa3   : > { %355 = vst.msk [vmem:[%s1335_s5 + $0x20] sm:$0x1] %vm352_vm2, %v350_v45  ;;  %v549_v62 = vrot.slane %v543_v51, 4  ;;  %v333_v1 = vrot.slane %v324_v58, 4 }
  0xa4   : > { %356 = vst.msk [vmem:[%s1335_s5 + $0x30] sm:$0x1] %vm352_vm2, %v351_v46  ;;  %v478_v63 = vsel %vm1318_vm1, %v470_v48, %v476_v55  ;;  %v407_v9 = vrot.slane %v400_v59, 4 }
  0xa5   : > { %427 = vst.msk [vmem:[%s1335_s5 + $0x12] sm:$0x1] %vm352_vm2, %v423_v49  ;;  %v488_v2 = vrot.slane %v478_v63, 1  ;;  %v489_v3 = vrot.slane %v478_v63, 2  ;;  %v490_v4 = vrot.slane %v478_v63, 3  ;;  %v495_v5 = vadd.f32 %v483_v50, %v478_v63 }
  0xa6   : > { %428 = vst.msk [vmem:[%s1335_s5 + $0x22] sm:$0x1] %vm352_vm2, %v424_v54  ;;  %v551_v6 = vsel %vm1318_vm1, %v543_v51, %v549_v62  ;;  %v335_v8 = vsel %vm1318_vm1, %v324_v58, %v333_v1  ;;  %v409_v30 = vsel %vm1318_vm1, %v400_v59, %v407_v9  ;;  %v432_v49 = vld [vmem:[%s1312_s29 + $0x23] sm:$0x1]  ;;  %v433_v51 = vld [vmem:[%s1312_s29 + $0x33] sm:$0x1] }
  0xa7   : > { %429 = vst.msk [vmem:[%s1335_s5 + $0x32] sm:$0x1] %vm352_vm2, %v425_v60  ;;  %v496_v10 = vadd.f32 %v488_v2, %v484_v56  ;;  %v497_v11 = vadd.f32 %v489_v3, %v485_v57  ;;  %v498_v12 = vadd.f32 %v490_v4, %v486_v61  ;;  %v561_v14 = vrot.slane %v551_v6, 1  ;;  %v472_v25 = vpop.f32.mrf.mxu2  ;;  %v545_v26 = vpop.f32.mrf.mxu3  ;;  %v503_v56 = vld [vmem:[%s1312_s29 + $0x5] sm:$0x1] }
  0xa8   : > { %499 = vst.msk [vmem:[%s1335_s5 + $0x4] sm:$0x1] %vm352_vm2, %v495_v5  ;;  %v562_v17 = vrot.slane %v551_v6, 2  ;;  %v563_v18 = vrot.slane %v551_v6, 3  ;;  %v568_v19 = vadd.f32 %v556_v0, %v551_v6  ;;  %v362_v23 = vrot.slane %v335_v8, 1  ;;  %v615_v43 = vpop.f32.mrf.mxu0  ;;  %v688_v54 = vpop.f32.mrf.mxu1 }
  0xa9   : > { %500 = vst.msk [vmem:[%s1335_s5 + $0x14] sm:$0x1] %vm352_vm2, %v496_v10  ;;  %v569_v20 = vadd.f32 %v561_v14, %v557_v7  ;;  %v363_v24 = vrot.slane %v335_v8, 2  ;;  %v364_v32 = vrot.slane %v335_v8, 3  ;;  %v369_v34 = vadd.f32 %v357_v22, %v335_v8  ;;  %v504_v60 = vld [vmem:[%s1312_s29 + $0x15] sm:$0x1] }
  0xaa   : > { %501 = vst.msk [vmem:[%s1335_s5 + $0x24] sm:$0x1] %vm352_vm2, %v497_v11  ;;  %v570_v27 = vadd.f32 %v562_v17, %v558_v13  ;;  %v571_v31 = vadd.f32 %v563_v18, %v559_v16  ;;  %v473_v37 = vadd.f32 %v472_v25, %v1332_v36  ;;  %v546_v38 = vadd.f32 %v545_v26, %v1332_v36  ;;  %v505_v1 = vld [vmem:[%s1312_s29 + $0x25] sm:$0x1]  ;;  %v506_v4 = vld [vmem:[%s1312_s29 + $0x35] sm:$0x1] }
  0xab   : > { %502 = vst.msk [vmem:[%s1335_s5 + $0x34] sm:$0x1] %vm352_vm2, %v498_v12  ;;  %v370_v39 = vadd.f32 %v362_v23, %v358_v28  ;;  %v371_v40 = vadd.f32 %v363_v24, %v359_v29  ;;  %v435_v42 = vrot.slane %v409_v30, 1  ;;  %v436_v44 = vrot.slane %v409_v30, 2  ;;  %v576_v7 = vld [vmem:[%s1312_s29 + $0x7] sm:$0x1] }
  0xac   : > { %572 = vst.msk [vmem:[%s1335_s5 + $0x6] sm:$0x1] %vm352_vm2, %v568_v19  ;;  %v480_v45 = vrot.slane %v473_v37, 4  ;;  %v553_v46 = vrot.slane %v546_v38, 4  ;;  %v616_v47 = vadd.f32 %v615_v43, %v1304_v15  ;;  %v372_v48 = vadd.f32 %v364_v32, %v360_v33  ;;  %v577_v11 = vld [vmem:[%s1312_s29 + $0x17] sm:$0x1] }
  0xad   : > { %573 = vst.msk [vmem:[%s1335_s5 + $0x16] sm:$0x1] %vm352_vm2, %v569_v20  ;;  %v437_v50 = vrot.slane %v409_v30, 3  ;;  %v442_v52 = vadd.f32 %v430_v35, %v409_v30  ;;  %v443_v55 = vadd.f32 %v435_v42, %v431_v41  ;;  %v689_v58 = vadd.f32 %v688_v54, %v1304_v15  ;;  %v578_v18 = vld [vmem:[%s1312_s29 + $0x27] sm:$0x1] }
  0xae   : > { %574 = vst.msk [vmem:[%s1335_s5 + $0x26] sm:$0x1] %vm352_vm2, %v570_v27  ;;  %v482_v53 = vsel %vm1318_vm1, %v473_v37, %v480_v45  ;;  %v444_v59 = vadd.f32 %v436_v44, %v432_v49  ;;  %v555_v62 = vsel %vm1318_vm1, %v546_v38, %v553_v46  ;;  %v622_v63 = vrot.slane %v616_v47, 4  ;;  %v579_v20 = vld [vmem:[%s1312_s29 + $0x37] sm:$0x1] }
  0xaf   : > { %575 = vst.msk [vmem:[%s1335_s5 + $0x36] sm:$0x1] %vm352_vm2, %v571_v31  ;;  %v508_v57 = vrot.slane %v482_v53, 1  ;;  %v509_v61 = vrot.slane %v482_v53, 2  ;;  %v445_v0 = vadd.f32 %v437_v50, %v433_v51  ;;  %v510_v2 = vrot.slane %v482_v53, 3  ;;  %v761_v3 = vpop.f32.mrf.mxu2  ;;  %v834_v16 = vpop.f32.mrf.mxu3 }
  0xb0   : > { %373 = vst.msk [vmem:[%s1335_s5 + $0x1] sm:$0x1] %vm352_vm2, %v369_v34  ;;  %v515_v5 = vadd.f32 %v503_v56, %v482_v53  ;;  %v581_v8 = vrot.slane %v555_v62, 1  ;;  %v695_v9 = vrot.slane %v689_v58, 4  ;;  %v582_v12 = vrot.slane %v555_v62, 2  ;;  %v618_v35 = vpop.f32.mrf.mxu0  ;;  %v691_v50 = vpop.f32.mrf.mxu1 }
  0xb1   : > { %374 = vst.msk [vmem:[%s1335_s5 + $0x11] sm:$0x1] %vm352_vm2, %v370_v39  ;;  %v516_v6 = vadd.f32 %v508_v57, %v504_v60  ;;  %v517_v10 = vadd.f32 %v509_v61, %v505_v1  ;;  %v624_v13 = vsel %vm1318_vm1, %v616_v47, %v622_v63  ;;  %v762_v14 = vadd.f32 %v761_v3, %v1304_v15  ;;  %v629_v24 = vld [vmem:[%s1312_s29 + $0x8] sm:$0x1]  ;;  %v630_v28 = vld [vmem:[%s1312_s29 + $0x18] sm:$0x1] }
  0xb2   : > { %375 = vst.msk [vmem:[%s1335_s5 + $0x21] sm:$0x1] %vm352_vm2, %v371_v40  ;;  %v518_v17 = vadd.f32 %v510_v2, %v506_v4  ;;  %v583_v19 = vrot.slane %v555_v62, 3  ;;  %v588_v22 = vadd.f32 %v576_v7, %v555_v62  ;;  %v589_v23 = vadd.f32 %v581_v8, %v577_v11  ;;  %v631_v33 = vld [vmem:[%s1312_s29 + $0x28] sm:$0x1] }
  0xb3   : > { %376 = vst.msk [vmem:[%s1335_s5 + $0x31] sm:$0x1] %vm352_vm2, %v372_v48  ;;  %v634_v25 = vrot.slane %v624_v13, 1  ;;  %v835_v26 = vadd.f32 %v834_v16, %v1304_v15  ;;  %v590_v27 = vadd.f32 %v582_v12, %v578_v18  ;;  %v635_v29 = vrot.slane %v624_v13, 2  ;;  %v632_v15 = vld [vmem:[%s1312_s29 + $0x38] sm:$0x1] }
  0xb4   : > { %446 = vst.msk [vmem:[%s1335_s5 + $0x3] sm:$0x1] %vm352_vm2, %v442_v52  ;;  %v697_v30 = vsel %vm1318_vm1, %v689_v58, %v695_v9  ;;  %v768_v31 = vrot.slane %v762_v14, 4  ;;  %v591_v32 = vadd.f32 %v583_v19, %v579_v20  ;;  %v636_v34 = vrot.slane %v624_v13, 3  ;;  %v702_v38 = vld [vmem:[%s1312_s29 + $0xa] sm:$0x1] }
  0xb5   : > { %447 = vst.msk [vmem:[%s1335_s5 + $0x13] sm:$0x1] %vm352_vm2, %v443_v55  ;;  %v641_v37 = vadd.f32 %v629_v24, %v624_v13  ;;  %v642_v39 = vadd.f32 %v634_v25, %v630_v28  ;;  %v703_v40 = vld [vmem:[%s1312_s29 + $0x1a] sm:$0x1]  ;;  %v707_v41 = vrot.slane %v697_v30, 1  ;;  %v708_v42 = vrot.slane %v697_v30, 2 }
  0xb6   : > { %448 = vst.msk [vmem:[%s1335_s5 + $0x23] sm:$0x1] %vm352_vm2, %v444_v59  ;;  %v643_v43 = vadd.f32 %v635_v29, %v631_v33  ;;  %v704_v44 = vld [vmem:[%s1312_s29 + $0x2a] sm:$0x1]  ;;  %v770_v45 = vsel %vm1318_vm1, %v762_v14, %v768_v31  ;;  %v841_v46 = vrot.slane %v835_v26, 4  ;;  %v619_v47 = vadd.f32 %v618_v35, %v1332_v36 }
  0xb7   : > { %449 = vst.msk [vmem:[%s1335_s5 + $0x33] sm:$0x1] %vm352_vm2, %v445_v0  ;;  %v644_v48 = vadd.f32 %v636_v34, %v632_v15  ;;  %v709_v49 = vrot.slane %v697_v30, 3  ;;  %v705_v51 = vld [vmem:[%s1312_s29 + $0x3a] sm:$0x1]  ;;  %v714_v52 = vadd.f32 %v702_v38, %v697_v30  ;;  %v715_v53 = vadd.f32 %v707_v41, %v703_v40  ;;  %v764_v62 = vpop.f32.mrf.mxu2 }
  0xb8   : > { %519 = vst.msk [vmem:[%s1335_s5 + $0x5] sm:$0x1] %vm352_vm2, %v515_v5  ;;  %v716_v54 = vadd.f32 %v708_v42, %v704_v44  ;;  %v775_v55 = vld [vmem:[%s1312_s29 + $0xc] sm:$0x1]  ;;  %v780_v56 = vrot.slane %v770_v45, 1  ;;  %v781_v58 = vrot.slane %v770_v45, 2  ;;  %v843_v59 = vsel %vm1318_vm1, %v835_v26, %v841_v46 }
  0xb9   : > { %520 = vst.msk [vmem:[%s1335_s5 + $0x15] sm:$0x1] %vm352_vm2, %v516_v6  ;;  %v776_v57 = vld [vmem:[%s1312_s29 + $0x1c] sm:$0x1]  ;;  %v626_v60 = vrot.slane %v619_v47, 4  ;;  %v692_v61 = vadd.f32 %v691_v50, %v1332_v36  ;;  %v717_v63 = vadd.f32 %v709_v49, %v705_v51  ;;  %v782_v1 = vrot.slane %v770_v45, 3 }
  0xba   : > { %521 = vst.msk [vmem:[%s1335_s5 + $0x25] sm:$0x1] %vm352_vm2, %v517_v10  ;;  %v777_v0 = vld [vmem:[%s1312_s29 + $0x2c] sm:$0x1]  ;;  %v778_v2 = vld [vmem:[%s1312_s29 + $0x3c] sm:$0x1]  ;;  %v787_v3 = vadd.f32 %v775_v55, %v770_v45  ;;  %v788_v4 = vadd.f32 %v780_v56, %v776_v57  ;;  %v765_v7 = vadd.f32 %v764_v62, %v1332_v36 }
  0xbb   : > { %522 = vst.msk [vmem:[%s1335_s5 + $0x35] sm:$0x1] %vm352_vm2, %v518_v17  ;;  %v848_v5 = vld [vmem:[%s1312_s29 + $0xe] sm:$0x1]  ;;  %v853_v6 = vrot.slane %v843_v59, 1  ;;  %v789_v8 = vadd.f32 %v781_v58, %v777_v0  ;;  %v854_v10 = vrot.slane %v843_v59, 2  ;;  %v628_v11 = vsel %vm1318_vm1, %v619_v47, %v626_v60  ;;  %v837_v17 = vpop.f32.mrf.mxu3 }
  0xbc   : > { %592 = vst.msk [vmem:[%s1335_s5 + $0x7] sm:$0x1] %vm352_vm2, %v588_v22  ;;  %v849_v9 = vld [vmem:[%s1312_s29 + $0x1e] sm:$0x1]  ;;  %v699_v12 = vrot.slane %v692_v61, 4  ;;  %v790_v13 = vadd.f32 %v782_v1, %v778_v2  ;;  %v855_v16 = vrot.slane %v843_v59, 3  ;;  %v860_v19 = vadd.f32 %v848_v5, %v843_v59 }
  0xbd   : > { %593 = vst.msk [vmem:[%s1335_s5 + $0x17] sm:$0x1] %vm352_vm2, %v589_v23  ;;  %v850_v14 = vld [vmem:[%s1312_s29 + $0x2e] sm:$0x1]  ;;  %v851_v18 = vld [vmem:[%s1312_s29 + $0x3e] sm:$0x1]  ;;  %v861_v20 = vadd.f32 %v853_v6, %v849_v9  ;;  %v838_v29 = vadd.f32 %v837_v17, %v1332_v36 }
  0xbe   : > { %594 = vst.msk [vmem:[%s1335_s5 + $0x27] sm:$0x1] %vm352_vm2, %v590_v27  ;;  %v649_v22 = vld [vmem:[%s1312_s29 + $0x9] sm:$0x1]  ;;  %v654_v23 = vrot.slane %v628_v11, 1  ;;  %v772_v24 = vrot.slane %v765_v7, 4  ;;  %v862_v25 = vadd.f32 %v854_v10, %v850_v14  ;;  %v701_v28 = vsel %vm1318_vm1, %v692_v61, %v699_v12 }
  0xbf   : > { %595 = vst.msk [vmem:[%s1335_s5 + $0x37] sm:$0x1] %vm352_vm2, %v591_v32  ;;  %v650_v26 = vld [vmem:[%s1312_s29 + $0x19] sm:$0x1]  ;;  %v655_v27 = vrot.slane %v628_v11, 2  ;;  %v863_v30 = vadd.f32 %v855_v16, %v851_v18  ;;  %v656_v32 = vrot.slane %v628_v11, 3  ;;  %v661_v34 = vadd.f32 %v649_v22, %v628_v11 }
  0xc0   : > { %645 = vst.msk [vmem:[%s1335_s5 + $0x8] sm:$0x1] %vm352_vm2, %v641_v37  ;;  %v651_v31 = vld [vmem:[%s1312_s29 + $0x29] sm:$0x1]  ;;  %v652_v33 = vld [vmem:[%s1312_s29 + $0x39] sm:$0x1]  ;;  %v662_v35 = vadd.f32 %v654_v23, %v650_v26  ;;  %v774_v40 = vsel %vm1318_vm1, %v765_v7, %v772_v24 }
  0xc1   : > { %646 = vst.msk [vmem:[%s1335_s5 + $0x18] sm:$0x1] %vm352_vm2, %v642_v39  ;;  %v722_v15 = vld [vmem:[%s1312_s29 + $0xb] sm:$0x1]  ;;  %v727_v37 = vrot.slane %v701_v28, 1  ;;  %v663_v36 = vadd.f32 %v655_v27, %v651_v31  ;;  %v728_v39 = vrot.slane %v701_v28, 2  ;;  %v664_v42 = vadd.f32 %v656_v32, %v652_v33 }
  0xc2   : > { %647 = vst.msk [vmem:[%s1335_s5 + $0x28] sm:$0x1] %vm352_vm2, %v643_v43  ;;  %v723_v38 = vld [vmem:[%s1312_s29 + $0x1b] sm:$0x1]  ;;  %v845_v41 = vrot.slane %v838_v29, 4  ;;  %v729_v44 = vrot.slane %v701_v28, 3  ;;  %v734_v46 = vadd.f32 %v722_v15, %v701_v28 }
  0xc3   : > { %648 = vst.msk [vmem:[%s1335_s5 + $0x38] sm:$0x1] %vm352_vm2, %v644_v48  ;;  %v724_v43 = vld [vmem:[%s1312_s29 + $0x2b] sm:$0x1]  ;;  %v725_v45 = vld [vmem:[%s1312_s29 + $0x3b] sm:$0x1]  ;;  %v735_v47 = vadd.f32 %v727_v37, %v723_v38 }
  0xc4   : > { %718 = vst.msk [vmem:[%s1335_s5 + $0xa] sm:$0x1] %vm352_vm2, %v714_v52  ;;  %v795_v48 = vld [vmem:[%s1312_s29 + $0xd] sm:$0x1]  ;;  %v800_v49 = vrot.slane %v774_v40, 1  ;;  %v736_v50 = vadd.f32 %v728_v39, %v724_v43  ;;  %v801_v52 = vrot.slane %v774_v40, 2 }
  0xc5   : > { %719 = vst.msk [vmem:[%s1335_s5 + $0x1a] sm:$0x1] %vm352_vm2, %v715_v53  ;;  %v796_v51 = vld [vmem:[%s1312_s29 + $0x1d] sm:$0x1]  ;;  %v847_v53 = vsel %vm1318_vm1, %v838_v29, %v845_v41  ;;  %v797_v55 = vld [vmem:[%s1312_s29 + $0x2d] sm:$0x1]  ;;  %v807_v58 = vadd.f32 %v795_v48, %v774_v40 }
  0xc6   : > { %720 = vst.msk [vmem:[%s1335_s5 + $0x2a] sm:$0x1] %vm352_vm2, %v716_v54  ;;  %v737_v54 = vadd.f32 %v729_v44, %v725_v45  ;;  %v802_v56 = vrot.slane %v774_v40, 3  ;;  %v798_v57 = vld [vmem:[%s1312_s29 + $0x3d] sm:$0x1]  ;;  %v808_v21 = vadd.f32 %v800_v49, %v796_v51  ;;  %v873_v60 = vrot.slane %v847_v53, 1 }
  0xc7   : > { %721 = vst.msk [vmem:[%s1335_s5 + $0x3a] sm:$0x1] %vm352_vm2, %v717_v63  ;;  %v868_v59 = vld [vmem:[%s1312_s29 + $0xf] sm:$0x1]  ;;  %v809_v61 = vadd.f32 %v801_v52, %v797_v55  ;;  %v869_v62 = vld [vmem:[%s1312_s29 + $0x1f] sm:$0x1] }
  0xc8   : > { %791 = vst.msk [vmem:[%s1335_s5 + $0xc] sm:$0x1] %vm352_vm2, %v787_v3  ;;  %v874_v63 = vrot.slane %v847_v53, 2  ;;  %v810_v0 = vadd.f32 %v802_v56, %v798_v57  ;;  %v870_v1 = vld [vmem:[%s1312_s29 + $0x2f] sm:$0x1]  ;;  %v875_v2 = vrot.slane %v847_v53, 3  ;;  %v881_v5 = vadd.f32 %v873_v60, %v869_v62 }
  0xc9   : > { %792 = vst.msk [vmem:[%s1335_s5 + $0x1c] sm:$0x1] %vm352_vm2, %v788_v4  ;;  %v871_v3 = vld [vmem:[%s1312_s29 + $0x3f] sm:$0x1]  ;;  %v880_v4 = vadd.f32 %v868_v59, %v847_v53 }
  0xca   : > { %793 = vst.msk [vmem:[%s1335_s5 + $0x2c] sm:$0x1] %vm352_vm2, %v789_v8  ;;  %v882_v6 = vadd.f32 %v874_v63, %v870_v1  ;;  %v883_v7 = vadd.f32 %v875_v2, %v871_v3 }
  0xcb   : > { %794 = vst.msk [vmem:[%s1335_s5 + $0x3c] sm:$0x1] %vm352_vm2, %v790_v13 }
  0xcc   : > { %864 = vst.msk [vmem:[%s1335_s5 + $0xe] sm:$0x1] %vm352_vm2, %v860_v19 }
  0xcd   : > { %865 = vst.msk [vmem:[%s1335_s5 + $0x1e] sm:$0x1] %vm352_vm2, %v861_v20 }
  0xce   : > { %866 = vst.msk [vmem:[%s1335_s5 + $0x2e] sm:$0x1] %vm352_vm2, %v862_v25 }
  0xcf   : > { %867 = vst.msk [vmem:[%s1335_s5 + $0x3e] sm:$0x1] %vm352_vm2, %v863_v30 }
  0xd0   : > { %665 = vst.msk [vmem:[%s1335_s5 + $0x9] sm:$0x1] %vm352_vm2, %v661_v34 }
  0xd1   : > { %666 = vst.msk [vmem:[%s1335_s5 + $0x19] sm:$0x1] %vm352_vm2, %v662_v35 }
  0xd2   : > { %667 = vst.msk [vmem:[%s1335_s5 + $0x29] sm:$0x1] %vm352_vm2, %v663_v36 }
  0xd3   : > { %668 = vst.msk [vmem:[%s1335_s5 + $0x39] sm:$0x1] %vm352_vm2, %v664_v42 }
  0xd4   : > { %738 = vst.msk [vmem:[%s1335_s5 + $0xb] sm:$0x1] %vm352_vm2, %v734_v46 }
  0xd5   : > { %739 = vst.msk [vmem:[%s1335_s5 + $0x1b] sm:$0x1] %vm352_vm2, %v735_v47 }
  0xd6   : > { %740 = vst.msk [vmem:[%s1335_s5 + $0x2b] sm:$0x1] %vm352_vm2, %v736_v50 }
  0xd7   : > { %741 = vst.msk [vmem:[%s1335_s5 + $0x3b] sm:$0x1] %vm352_vm2, %v737_v54 }
  0xd8   : > { %811 = vst.msk [vmem:[%s1335_s5 + $0xd] sm:$0x1] %vm352_vm2, %v807_v58 }
  0xd9   : > { %812 = vst.msk [vmem:[%s1335_s5 + $0x1d] sm:$0x1] %vm352_vm2, %v808_v21 }
  0xda   : > { %813 = vst.msk [vmem:[%s1335_s5 + $0x2d] sm:$0x1] %vm352_vm2, %v809_v61 }
  0xdb   : > { %814 = vst.msk [vmem:[%s1335_s5 + $0x3d] sm:$0x1] %vm352_vm2, %v810_v0 }
  0xdc   : > { %884 = vst.msk [vmem:[%s1335_s5 + $0xf] sm:$0x1] %vm352_vm2, %v880_v4 }
  0xdd   : > { %885 = vst.msk [vmem:[%s1335_s5 + $0x1f] sm:$0x1] %vm352_vm2, %v881_v5 }
  0xde   : > { %886 = vst.msk [vmem:[%s1335_s5 + $0x2f] sm:$0x1] %vm352_vm2, %v882_v6 }
  0xdf   : > { %887 = vst.msk [vmem:[%s1335_s5 + $0x3f] sm:$0x1] %vm352_vm2, %v883_v7 }
  0xe0   : > { %1130 = shalt.err (!%p1127_p5)
}
  0xe1   : > { %s1184_s22 = smov 128   ;;  %s1185_s30 = smov 8  }
  0xe2   : > { %1044 = dma.vmem_to_hbm [thread:$0]  (%p1251_p4), %s904_s9, 1024, %s906_s10, %s889_s11, %s1184_s22, %s1184_s22, %s1185_s30  }
  0xe3 PF: > { %p1050_p6 = scmp.ge.s32.totalorder %s1181_s20, 2  ;;  %s920_s5 = sand.u32 1, %s1161_s15  }
  0xe4   : > { %s921_s6 = scalar_lea.sflag [#allocation3], %s920_s5 }
  0xe5   : > { %p1047_p7 = pnand %p1050_p6, %p1258_p8 }
  0xe7   : > { %p1048_p9 = pneg %p1047_p7 }
  0xe9   : > { %1156 = dma.done.wait (%p1048_p9), %s921_s6, 1024  }
  0xea   : > { %1158 = vsyncadd (%p1048_p9), %s921_s6, 4294966272  ;;  %s17_s20 = sadd.s32 1, %s1181_s20   ;;  %s1612_s15 = smov %s1165_s16 }
  0xeb   : > { %p14_p10 = scmp.ge.s32.totalorder %s17_s20, 4   ;;  %s1613_s16 = smov %s1169_s17 }
  0xec   : > { %s1614_s17 = smov %s1264_s28  ;;  %s1615_s18 = smov %s1177_s19 }
  0xed   : > { %s1616_s19 = smov %s1618_s23  ;;  %16 = sbr.rel (!%p14_p10) target bundleno = 4 (0x4), region = 81 }
  0xf2   :  { %927 = vsyncpa [#allocation3], 1 }
  0xf3   :  { %929 = vsyncpa [#allocation3 + $0x1], 1 }

</bundles_post_ra>
